<compile_context>
chip_gen: v7x
topology: tpu7x:2x2x1
jax: 0.10.0
libtpu: 0.0.40
codegen_flags: <defaults>
</compile_context>

<pallas_src>
import functools
import math

import jax
import jax.numpy as jnp
from jax.experimental import pallas as pl
from jax.experimental.pallas import tpu as pltpu


def _layer_norm(v, g, b, eps=1e-6):
    # torch.nn.LayerNorm(hidden, eps=1e-06) in the module -> eps=1e-6 here.
    mu = jnp.mean(v, axis=-1, keepdims=True)
    var = jnp.mean((v - mu) ** 2, axis=-1, keepdims=True)
    return (v - mu) * jax.lax.rsqrt(var + eps) * g + b


def block_kernel(num_heads, head_dim,
                 x_ref, ln1g_ref, ln1b_ref,
                 wqkv_ref, bqkv_ref, wo_ref, bo_ref,
                 ln2g_ref, ln2b_ref,
                 w1_ref, b1_ref, w2_ref, b2_ref,
                 out_ref, probs_ref,
                 ctx_ref):
    H = x_ref.shape[-1]
    x = x_ref[0]                                      # (S, H) f32

    # ---- attention branch ---------------------------------------------------
    xn = _layer_norm(x, ln1g_ref[...], ln1b_ref[...])
    qkv = jnp.dot(xn.astype(jnp.bfloat16), wqkv_ref[...],
                  preferred_element_type=jnp.float32) + bqkv_ref[...]   # (S, 3H)

    scale = 1.0 / math.sqrt(head_dim)
    q = (qkv[:, :H] * scale).astype(jnp.bfloat16)     # fold softmax scale into q
    k = qkv[:, H:2 * H].astype(jnp.bfloat16)
    v = qkv[:, 2 * H:].astype(jnp.bfloat16)

    for h in range(num_heads):                        # static unroll over heads
        sl = slice(h * head_dim, (h + 1) * head_dim)
        qh, kh, vh = q[:, sl], k[:, sl], v[:, sl]
        # contract last dims (no materialized kh.T)
        scores = jax.lax.dot_general(
            qh, kh, (((1,), (1,)), ((), ())),
            preferred_element_type=jnp.float32)       # (S, S) f32
        scores = scores - jnp.max(scores, axis=-1, keepdims=True)
        e = jnp.exp(scores)
        denom = jnp.sum(e, axis=-1, keepdims=True)
        p = e * pl.reciprocal(denom, approx=True)     # softmax(dim=-1)
        probs_ref[0, h, :, :] = p                     # direct per-head write
        ctx_ref[:, sl] = jnp.dot(p.astype(jnp.bfloat16), vh,
                                 preferred_element_type=jnp.float32)

    attn_out = jnp.dot(ctx_ref[...].astype(jnp.bfloat16), wo_ref[...],
                       preferred_element_type=jnp.float32) + bo_ref[...]
    x1 = attn_out + x                                 # residual 1 (f32)

    # ---- ffn branch ----------------------------------------------------------
    xn2 = _layer_norm(x1, ln2g_ref[...], ln2b_ref[...])
    hdn = jnp.dot(xn2.astype(jnp.bfloat16), w1_ref[...],
                  preferred_element_type=jnp.float32) + b1_ref[...]
    # exact (erf-based) GELU -- matches torch.nn.functional.gelu default
    hdn = 0.5 * hdn * (1.0 + jax.lax.erf(hdn * (1.0 / math.sqrt(2.0))))
    ffn = jnp.dot(hdn.astype(jnp.bfloat16), w2_ref[...],
                  preferred_element_type=jnp.float32) + b2_ref[...]

    out_ref[0] = (ffn + x1).astype(out_ref.dtype)     # residual 2


def transformer_block(x, params, num_heads):
    B, S, H = x.shape
    head_dim = H // num_heads
    mlp_dim = params["w1"].shape[1]

    # Fused QKV weights (bf16) + fused bias (f32); other weights also bf16.
    wqkv = jnp.concatenate(
        [params["wq"], params["wk"], params["wv"]], axis=1).astype(jnp.bfloat16)
    bqkv = jnp.concatenate([params["bq"], params["bk"], params["bv"]], axis=1)
    wo = params["wo"].astype(jnp.bfloat16)
    w1 = params["w1"].astype(jnp.bfloat16)
    w2 = params["w2"].astype(jnp.bfloat16)

    def rep2d(shp):
        # Constant block index -> weight tile is fetched once and reused
        # across all grid steps (no per-step re-DMA).
        return pl.BlockSpec(shp, lambda b: (0, 0))

    in_specs = [
        pl.BlockSpec((1, S, H), lambda b: (b, 0, 0)),   # x: one batch row / step
        rep2d((1, H)), rep2d((1, H)),                   # ln1 gamma/beta
        rep2d((H, 3 * H)), rep2d((1, 3 * H)),           # fused Wqkv, bqkv
        rep2d((H, H)), rep2d((1, H)),                   # Wo, bo
        rep2d((1, H)), rep2d((1, H)),                   # ln2 gamma/beta
        rep2d((H, mlp_dim)), rep2d((1, mlp_dim)),       # W1, b1
        rep2d((mlp_dim, H)), rep2d((1, H)),             # W2, b2
    ]
    out_specs = (
        pl.BlockSpec((1, S, H), lambda b: (b, 0, 0)),
        pl.BlockSpec((1, num_heads, S, S), lambda b: (b, 0, 0, 0)),
    )
    out_shape = (
        jax.ShapeDtypeStruct((B, S, H), x.dtype),
        jax.ShapeDtypeStruct((B, num_heads, S, S), jnp.float32),
    )

    # Advisory cost estimate for XLA's scheduler around the custom call.
    flops_per_row = (2 * S * H * 3 * H                         # qkv projection
                     + num_heads * 2 * (2 * S * S * head_dim)  # QK^T and PV
                     + 2 * S * H * H                           # out projection
                     + 2 * S * H * mlp_dim                     # fc1
                     + 2 * S * mlp_dim * H)                    # fc2
    transc_per_row = num_heads * S * S + S * mlp_dim + 4 * S   # exp, erf, rsqrt
    weight_bytes = (wqkv.size * 2 + wo.size * 2 + w1.size * 2 + w2.size * 2
                    + (bqkv.size + params["bo"].size + params["b1"].size
                       + params["b2"].size + 4 * H) * 4)
    bytes_accessed = int(2 * B * S * H * 4                     # x in + out
                         + B * num_heads * S * S * 4           # probs out
                         + weight_bytes)
    cost = pl.CostEstimate(flops=int(B * flops_per_row),
                           transcendentals=int(B * transc_per_row),
                           bytes_accessed=bytes_accessed)

    kernel = functools.partial(block_kernel, num_heads, head_dim)
    return pl.pallas_call(
        kernel,
        grid=(B,),
        in_specs=in_specs,
        out_specs=out_specs,
        out_shape=out_shape,
        scratch_shapes=[pltpu.VMEM((S, H), jnp.float32)],     # ctx accumulator
        compiler_params=pltpu.CompilerParams(
            dimension_semantics=("parallel",),
            vmem_limit_bytes=48 * 1024 * 1024,                # < 64 MiB physical (v7x-safe)
        ),
        cost_estimate=cost,
    )(x, params["ln1_g"], params["ln1_b"],
      wqkv, bqkv, wo, params["bo"],
      params["ln2_g"], params["ln2_b"],
      w1, params["b1"], w2, params["b2"])


# ---- pure-JAX f32 reference (for sanity check) ------------------------------
def _ref_block(x, p, num_heads):
    B, S, H = x.shape
    d = H // num_heads
    xn = _layer_norm(x, p["ln1_g"], p["ln1_b"])
    q = xn @ p["wq"] + p["bq"]
    k = xn @ p["wk"] + p["bk"]
    v = xn @ p["wv"] + p["bv"]
    qh = q.reshape(B, S, num_heads, d).transpose(0, 2, 1, 3)
    kh = k.reshape(B, S, num_heads, d).transpose(0, 2, 1, 3)
    vh = v.reshape(B, S, num_heads, d).transpose(0, 2, 1, 3)
    scores = (qh @ kh.transpose(0, 1, 3, 2)) / math.sqrt(d)
    probs = jax.nn.softmax(scores, axis=-1)
    ctx = (probs @ vh).transpose(0, 2, 1, 3).reshape(B, S, H)
    attn = ctx @ p["wo"] + p["bo"]
    x1 = attn + x
    xn2 = _layer_norm(x1, p["ln2_g"], p["ln2_b"])
    hdn = jax.nn.gelu(xn2 @ p["w1"] + p["b1"], approximate=False)
    ffn = hdn @ p["w2"] + p["b2"]
    return ffn + x1, probs


if __name__ == "__main__":
    B, S, H, num_heads, mlp_dim = 2, 8, 32, 4, 64
    key = jax.random.PRNGKey(0)
    ks = jax.random.split(key, 10)

    def xavier(k, shp):
        fan_in, fan_out = shp
        lim = math.sqrt(6.0 / (fan_in + fan_out))
        return jax.random.uniform(k, shp, jnp.float32, -lim, lim)

    params = dict(
        ln1_g=jnp.ones((1, H), jnp.float32), ln1_b=jnp.zeros((1, H), jnp.float32),
        wq=xavier(ks[0], (H, H)), bq=jnp.zeros((1, H), jnp.float32),
        wk=xavier(ks[1], (H, H)), bk=jnp.zeros((1, H), jnp.float32),
        wv=xavier(ks[2], (H, H)), bv=jnp.zeros((1, H), jnp.float32),
        wo=xavier(ks[3], (H, H)), bo=jnp.zeros((1, H), jnp.float32),
        ln2_g=jnp.ones((1, H), jnp.float32), ln2_b=jnp.zeros((1, H), jnp.float32),
        w1=xavier(ks[4], (H, mlp_dim)),
        b1=(1e-6 * jax.random.normal(ks[5], (1, mlp_dim))).astype(jnp.float32),
        w2=xavier(ks[6], (mlp_dim, H)),
        b2=(1e-6 * jax.random.normal(ks[7], (1, H))).astype(jnp.float32),
    )
    x = jax.random.normal(ks[8], (B, S, H), jnp.float32)

    out, weights = transformer_block(x, params, num_heads)
    jax.block_until_ready((out, weights))

    ref_out, ref_w = _ref_block(x, params, num_heads)
    # bf16 MXU operands (f32 accumulation) => ~1e-2 relative error vs f32 ref;
    # tolerances loosened accordingly (still catches structural/math bugs).
    assert jnp.allclose(weights, ref_w, rtol=3e-2, atol=3e-2), "attn weights mismatch"
    assert jnp.allclose(out, ref_out, rtol=5e-2, atol=1e-1), "output mismatch"

    print("KERNEL_OK")
</pallas_src>

<mosaic_0001>
module attributes {stable_mosaic.version = 11 : i64} {
  func.func @block_kernel(%arg0: i32, %arg1: memref<1x8x32xf32, #tpu.memory_space<vmem>>, %arg2: memref<1x32xf32, #tpu.memory_space<vmem>>, %arg3: memref<1x32xf32, #tpu.memory_space<vmem>>, %arg4: memref<32x96xbf16, #tpu.memory_space<vmem>>, %arg5: memref<1x96xf32, #tpu.memory_space<vmem>>, %arg6: memref<32x32xbf16, #tpu.memory_space<vmem>>, %arg7: memref<1x32xf32, #tpu.memory_space<vmem>>, %arg8: memref<1x32xf32, #tpu.memory_space<vmem>>, %arg9: memref<1x32xf32, #tpu.memory_space<vmem>>, %arg10: memref<32x64xbf16, #tpu.memory_space<vmem>>, %arg11: memref<1x64xf32, #tpu.memory_space<vmem>>, %arg12: memref<64x32xbf16, #tpu.memory_space<vmem>>, %arg13: memref<1x32xf32, #tpu.memory_space<vmem>>, %arg14: memref<1x8x32xf32, #tpu.memory_space<vmem>>, %arg15: memref<1x4x8x8xf32, #tpu.memory_space<vmem>>, %arg16: memref<8x32xf32, #tpu.memory_space<vmem>>) attributes {dimension_semantics = [#tpu.dimension_semantics<parallel>], iteration_bounds = array<i64: 2>, scalar_prefetch = 0 : i64, scratch_operands = 1 : i64, tpu.core_type = #tpu.core_type<tc>, window_params = [{transform_indices = @transform_0, window_bounds = array<i64: 1, 8, 32>}, {pipeline_mode = #tpu.pipeline_mode<synchronous>, transform_indices = @transform_1, window_bounds = array<i64: 1, 32>}, {pipeline_mode = #tpu.pipeline_mode<synchronous>, transform_indices = @transform_2, window_bounds = array<i64: 1, 32>}, {pipeline_mode = #tpu.pipeline_mode<synchronous>, transform_indices = @transform_3, window_bounds = array<i64: 32, 96>}, {pipeline_mode = #tpu.pipeline_mode<synchronous>, transform_indices = @transform_4, window_bounds = array<i64: 1, 96>}, {pipeline_mode = #tpu.pipeline_mode<synchronous>, transform_indices = @transform_5, window_bounds = array<i64: 32, 32>}, {pipeline_mode = #tpu.pipeline_mode<synchronous>, transform_indices = @transform_6, window_bounds = array<i64: 1, 32>}, {pipeline_mode = #tpu.pipeline_mode<synchronous>, transform_indices = @transform_7, window_bounds = array<i64: 1, 32>}, {pipeline_mode = #tpu.pipeline_mode<synchronous>, transform_indices = @transform_8, window_bounds = array<i64: 1, 32>}, {pipeline_mode = #tpu.pipeline_mode<synchronous>, transform_indices = @transform_9, window_bounds = array<i64: 32, 64>}, {pipeline_mode = #tpu.pipeline_mode<synchronous>, transform_indices = @transform_10, window_bounds = array<i64: 1, 64>}, {pipeline_mode = #tpu.pipeline_mode<synchronous>, transform_indices = @transform_11, window_bounds = array<i64: 64, 32>}, {pipeline_mode = #tpu.pipeline_mode<synchronous>, transform_indices = @transform_12, window_bounds = array<i64: 1, 32>}, {transform_indices = @transform_13, window_bounds = array<i64: 1, 8, 32>}, {transform_indices = @transform_14, window_bounds = array<i64: 1, 4, 8, 8>}]} {
    %c0 = arith.constant 0 : index
    %c0_0 = arith.constant 0 : index
    %c0_1 = arith.constant 0 : index
    %0 = vector.load %arg1[%c0, %c0_0, %c0_1] : memref<1x8x32xf32, #tpu.memory_space<vmem>>, vector<1x8x32xf32>
    %1 = vector.shape_cast %0 : vector<1x8x32xf32> to vector<8x32xf32>
    %c0_2 = arith.constant 0 : index
    %c0_3 = arith.constant 0 : index
    %2 = vector.load %arg2[%c0_2, %c0_3] : memref<1x32xf32, #tpu.memory_space<vmem>>, vector<1x32xf32>
    %c0_4 = arith.constant 0 : index
    %c0_5 = arith.constant 0 : index
    %3 = vector.load %arg3[%c0_4, %c0_5] : memref<1x32xf32, #tpu.memory_space<vmem>>, vector<1x32xf32>
    %cst = arith.constant dense<0.000000e+00> : vector<8xf32>
    %4 = vector.multi_reduction <add>, %1, %cst [1] : vector<8x32xf32> to vector<8xf32>
    %5 = vector.shape_cast %4 : vector<8xf32> to vector<8x1xf32>
    %cst_6 = arith.constant 3.200000e+01 : f32
    %6 = vector.broadcast %cst_6 : f32 to vector<8x1xf32>
    %7 = arith.divf %5, %6 : vector<8x1xf32>
    %8 = vector.broadcast %7 : vector<8x1xf32> to vector<8x32xf32>
    %9 = arith.subf %1, %8 : vector<8x32xf32>
    %10 = arith.mulf %9, %9 : vector<8x32xf32>
    %cst_7 = arith.constant dense<0.000000e+00> : vector<8xf32>
    %11 = vector.multi_reduction <add>, %10, %cst_7 [1] : vector<8x32xf32> to vector<8xf32>
    %12 = vector.shape_cast %11 : vector<8xf32> to vector<8x1xf32>
    %cst_8 = arith.constant 3.200000e+01 : f32
    %13 = vector.broadcast %cst_8 : f32 to vector<8x1xf32>
    %14 = arith.divf %12, %13 : vector<8x1xf32>
    %15 = vector.broadcast %7 : vector<8x1xf32> to vector<8x32xf32>
    %16 = arith.subf %1, %15 : vector<8x32xf32>
    %cst_9 = arith.constant 9.99999997E-7 : f32
    %17 = vector.broadcast %cst_9 : f32 to vector<8x1xf32>
    %18 = arith.addf %14, %17 : vector<8x1xf32>
    %19 = math.rsqrt %18 : vector<8x1xf32>
    %20 = vector.broadcast %19 : vector<8x1xf32> to vector<8x32xf32>
    %21 = arith.mulf %16, %20 : vector<8x32xf32>
    %22 = vector.broadcast %2 : vector<1x32xf32> to vector<8x32xf32>
    %23 = arith.mulf %21, %22 : vector<8x32xf32>
    %24 = vector.broadcast %3 : vector<1x32xf32> to vector<8x32xf32>
    %25 = arith.addf %23, %24 : vector<8x32xf32>
    %26 = arith.truncf %25 : vector<8x32xf32> to vector<8x32xbf16>
    %c0_10 = arith.constant 0 : index
    %c0_11 = arith.constant 0 : index
    %27 = vector.load %arg4[%c0_10, %c0_11] : memref<32x96xbf16, #tpu.memory_space<vmem>>, vector<32x96xbf16>
    %cst_12 = arith.constant dense<0.000000e+00> : vector<8x96xf32>
    %28 = tpu.matmul %26, %27, %cst_12 {dimension_numbers = #tpu.dot_dimension_numbers<[1], [0], [0], [1], [0, 0, 1, 1], [], []>} : vector<8x32xbf16>, vector<32x96xbf16>, vector<8x96xf32> -> vector<8x96xf32>
    %c0_13 = arith.constant 0 : index
    %c0_14 = arith.constant 0 : index
    %29 = vector.load %arg5[%c0_13, %c0_14] : memref<1x96xf32, #tpu.memory_space<vmem>>, vector<1x96xf32>
    %30 = vector.broadcast %29 : vector<1x96xf32> to vector<8x96xf32>
    %31 = arith.addf %28, %30 : vector<8x96xf32>
    %32 = vector.extract_strided_slice %31 {offsets = [0, 0], sizes = [8, 32], strides = [1, 1]} : vector<8x96xf32> to vector<8x32xf32>
    %cst_15 = arith.constant 0.353553385 : f32
    %33 = vector.broadcast %cst_15 : f32 to vector<8x32xf32>
    %34 = arith.mulf %32, %33 : vector<8x32xf32>
    %35 = arith.truncf %34 : vector<8x32xf32> to vector<8x32xbf16>
    %36 = vector.extract_strided_slice %31 {offsets = [0, 32], sizes = [8, 32], strides = [1, 1]} : vector<8x96xf32> to vector<8x32xf32>
    %37 = arith.truncf %36 : vector<8x32xf32> to vector<8x32xbf16>
    %38 = vector.extract_strided_slice %31 {offsets = [0, 64], sizes = [8, 32], strides = [1, 1]} : vector<8x96xf32> to vector<8x32xf32>
    %39 = arith.truncf %38 : vector<8x32xf32> to vector<8x32xbf16>
    %40 = vector.extract_strided_slice %35 {offsets = [0, 0], sizes = [8, 8], strides = [1, 1]} : vector<8x32xbf16> to vector<8x8xbf16>
    %41 = vector.extract_strided_slice %37 {offsets = [0, 0], sizes = [8, 8], strides = [1, 1]} : vector<8x32xbf16> to vector<8x8xbf16>
    %42 = vector.extract_strided_slice %39 {offsets = [0, 0], sizes = [8, 8], strides = [1, 1]} : vector<8x32xbf16> to vector<8x8xbf16>
    %cst_16 = arith.constant dense<0.000000e+00> : vector<8x8xf32>
    %43 = tpu.matmul %40, %41, %cst_16 {dimension_numbers = #tpu.dot_dimension_numbers<[1], [1], [0], [0], [0, 0, 1, 0], [], []>} : vector<8x8xbf16>, vector<8x8xbf16>, vector<8x8xf32> -> vector<8x8xf32>
    %cst_17 = arith.constant dense<0xFF800000> : vector<8xf32>
    %44 = vector.multi_reduction <maximumf>, %43, %cst_17 [1] : vector<8x8xf32> to vector<8xf32>
    %45 = vector.shape_cast %44 : vector<8xf32> to vector<8x1xf32>
    %46 = vector.broadcast %45 : vector<8x1xf32> to vector<8x8xf32>
    %47 = arith.subf %43, %46 : vector<8x8xf32>
    %48 = math.exp %47 : vector<8x8xf32>
    %cst_18 = arith.constant dense<0.000000e+00> : vector<8xf32>
    %49 = vector.multi_reduction <add>, %48, %cst_18 [1] : vector<8x8xf32> to vector<8xf32>
    %50 = vector.shape_cast %49 : vector<8xf32> to vector<8x1xf32>
    %51 = tpu.reciprocal %50 {approx = true} : vector<8x1xf32> -> vector<8x1xf32>
    %52 = vector.broadcast %51 : vector<8x1xf32> to vector<8x8xf32>
    %53 = arith.mulf %48, %52 : vector<8x8xf32>
    %c0_19 = arith.constant 0 : index
    %c0_20 = arith.constant 0 : index
    %c0_21 = arith.constant 0 : index
    %c0_22 = arith.constant 0 : index
    %54 = vector.load %arg15[%c0_19, %c0_20, %c0_21, %c0_22] : memref<1x4x8x8xf32, #tpu.memory_space<vmem>>, vector<1x1x8x8xf32>
    %55 = vector.shape_cast %54 : vector<1x1x8x8xf32> to vector<8x8xf32>
    %56 = vector.shape_cast %53 : vector<8x8xf32> to vector<1x1x8x8xf32>
    tpu.vector_store %arg15[%c0_19, %c0_20, %c0_21, %c0_22], %56 {strides = array<i32>} : memref<1x4x8x8xf32, #tpu.memory_space<vmem>>, vector<1x1x8x8xf32>,
    %57 = arith.truncf %53 : vector<8x8xf32> to vector<8x8xbf16>
    %cst_23 = arith.constant dense<0.000000e+00> : vector<8x8xf32>
    %58 = tpu.matmul %57, %42, %cst_23 {dimension_numbers = #tpu.dot_dimension_numbers<[1], [0], [0], [1], [0, 0, 1, 1], [], []>} : vector<8x8xbf16>, vector<8x8xbf16>, vector<8x8xf32> -> vector<8x8xf32>
    %c0_24 = arith.constant 0 : index
    %c0_25 = arith.constant 0 : index
    %59 = vector.load %arg16[%c0_24, %c0_25] : memref<8x32xf32, #tpu.memory_space<vmem>>, vector<8x8xf32>
    tpu.vector_store %arg16[%c0_24, %c0_25], %58 {strides = array<i32>} : memref<8x32xf32, #tpu.memory_space<vmem>>, vector<8x8xf32>,
    %60 = vector.extract_strided_slice %35 {offsets = [0, 8], sizes = [8, 8], strides = [1, 1]} : vector<8x32xbf16> to vector<8x8xbf16>
    %61 = vector.extract_strided_slice %37 {offsets = [0, 8], sizes = [8, 8], strides = [1, 1]} : vector<8x32xbf16> to vector<8x8xbf16>
    %62 = vector.extract_strided_slice %39 {offsets = [0, 8], sizes = [8, 8], strides = [1, 1]} : vector<8x32xbf16> to vector<8x8xbf16>
    %cst_26 = arith.constant dense<0.000000e+00> : vector<8x8xf32>
    %63 = tpu.matmul %60, %61, %cst_26 {dimension_numbers = #tpu.dot_dimension_numbers<[1], [1], [0], [0], [0, 0, 1, 0], [], []>} : vector<8x8xbf16>, vector<8x8xbf16>, vector<8x8xf32> -> vector<8x8xf32>
    %cst_27 = arith.constant dense<0xFF800000> : vector<8xf32>
    %64 = vector.multi_reduction <maximumf>, %63, %cst_27 [1] : vector<8x8xf32> to vector<8xf32>
    %65 = vector.shape_cast %64 : vector<8xf32> to vector<8x1xf32>
    %66 = vector.broadcast %65 : vector<8x1xf32> to vector<8x8xf32>
    %67 = arith.subf %63, %66 : vector<8x8xf32>
    %68 = math.exp %67 : vector<8x8xf32>
    %cst_28 = arith.constant dense<0.000000e+00> : vector<8xf32>
    %69 = vector.multi_reduction <add>, %68, %cst_28 [1] : vector<8x8xf32> to vector<8xf32>
    %70 = vector.shape_cast %69 : vector<8xf32> to vector<8x1xf32>
    %71 = tpu.reciprocal %70 {approx = true} : vector<8x1xf32> -> vector<8x1xf32>
    %72 = vector.broadcast %71 : vector<8x1xf32> to vector<8x8xf32>
    %73 = arith.mulf %68, %72 : vector<8x8xf32>
    %c0_29 = arith.constant 0 : index
    %c1 = arith.constant 1 : index
    %c0_30 = arith.constant 0 : index
    %c0_31 = arith.constant 0 : index
    %74 = vector.load %arg15[%c0_29, %c1, %c0_30, %c0_31] : memref<1x4x8x8xf32, #tpu.memory_space<vmem>>, vector<1x1x8x8xf32>
    %75 = vector.shape_cast %74 : vector<1x1x8x8xf32> to vector<8x8xf32>
    %76 = vector.shape_cast %73 : vector<8x8xf32> to vector<1x1x8x8xf32>
    tpu.vector_store %arg15[%c0_29, %c1, %c0_30, %c0_31], %76 {strides = array<i32>} : memref<1x4x8x8xf32, #tpu.memory_space<vmem>>, vector<1x1x8x8xf32>,
    %77 = arith.truncf %73 : vector<8x8xf32> to vector<8x8xbf16>
    %cst_32 = arith.constant dense<0.000000e+00> : vector<8x8xf32>
    %78 = tpu.matmul %77, %62, %cst_32 {dimension_numbers = #tpu.dot_dimension_numbers<[1], [0], [0], [1], [0, 0, 1, 1], [], []>} : vector<8x8xbf16>, vector<8x8xbf16>, vector<8x8xf32> -> vector<8x8xf32>
    %c0_33 = arith.constant 0 : index
    %c8 = arith.constant 8 : index
    %79 = vector.load %arg16[%c0_33, %c8] : memref<8x32xf32, #tpu.memory_space<vmem>>, vector<8x8xf32>
    tpu.vector_store %arg16[%c0_33, %c8], %78 {strides = array<i32>} : memref<8x32xf32, #tpu.memory_space<vmem>>, vector<8x8xf32>,
    %80 = vector.extract_strided_slice %35 {offsets = [0, 16], sizes = [8, 8], strides = [1, 1]} : vector<8x32xbf16> to vector<8x8xbf16>
    %81 = vector.extract_strided_slice %37 {offsets = [0, 16], sizes = [8, 8], strides = [1, 1]} : vector<8x32xbf16> to vector<8x8xbf16>
    %82 = vector.extract_strided_slice %39 {offsets = [0, 16], sizes = [8, 8], strides = [1, 1]} : vector<8x32xbf16> to vector<8x8xbf16>
    %cst_34 = arith.constant dense<0.000000e+00> : vector<8x8xf32>
    %83 = tpu.matmul %80, %81, %cst_34 {dimension_numbers = #tpu.dot_dimension_numbers<[1], [1], [0], [0], [0, 0, 1, 0], [], []>} : vector<8x8xbf16>, vector<8x8xbf16>, vector<8x8xf32> -> vector<8x8xf32>
    %cst_35 = arith.constant dense<0xFF800000> : vector<8xf32>
    %84 = vector.multi_reduction <maximumf>, %83, %cst_35 [1] : vector<8x8xf32> to vector<8xf32>
    %85 = vector.shape_cast %84 : vector<8xf32> to vector<8x1xf32>
    %86 = vector.broadcast %85 : vector<8x1xf32> to vector<8x8xf32>
    %87 = arith.subf %83, %86 : vector<8x8xf32>
    %88 = math.exp %87 : vector<8x8xf32>
    %cst_36 = arith.constant dense<0.000000e+00> : vector<8xf32>
    %89 = vector.multi_reduction <add>, %88, %cst_36 [1] : vector<8x8xf32> to vector<8xf32>
    %90 = vector.shape_cast %89 : vector<8xf32> to vector<8x1xf32>
    %91 = tpu.reciprocal %90 {approx = true} : vector<8x1xf32> -> vector<8x1xf32>
    %92 = vector.broadcast %91 : vector<8x1xf32> to vector<8x8xf32>
    %93 = arith.mulf %88, %92 : vector<8x8xf32>
    %c0_37 = arith.constant 0 : index
    %c2 = arith.constant 2 : index
    %c0_38 = arith.constant 0 : index
    %c0_39 = arith.constant 0 : index
    %94 = vector.load %arg15[%c0_37, %c2, %c0_38, %c0_39] : memref<1x4x8x8xf32, #tpu.memory_space<vmem>>, vector<1x1x8x8xf32>
    %95 = vector.shape_cast %94 : vector<1x1x8x8xf32> to vector<8x8xf32>
    %96 = vector.shape_cast %93 : vector<8x8xf32> to vector<1x1x8x8xf32>
    tpu.vector_store %arg15[%c0_37, %c2, %c0_38, %c0_39], %96 {strides = array<i32>} : memref<1x4x8x8xf32, #tpu.memory_space<vmem>>, vector<1x1x8x8xf32>,
    %97 = arith.truncf %93 : vector<8x8xf32> to vector<8x8xbf16>
    %cst_40 = arith.constant dense<0.000000e+00> : vector<8x8xf32>
    %98 = tpu.matmul %97, %82, %cst_40 {dimension_numbers = #tpu.dot_dimension_numbers<[1], [0], [0], [1], [0, 0, 1, 1], [], []>} : vector<8x8xbf16>, vector<8x8xbf16>, vector<8x8xf32> -> vector<8x8xf32>
    %c0_41 = arith.constant 0 : index
    %c16 = arith.constant 16 : index
    %99 = vector.load %arg16[%c0_41, %c16] : memref<8x32xf32, #tpu.memory_space<vmem>>, vector<8x8xf32>
    tpu.vector_store %arg16[%c0_41, %c16], %98 {strides = array<i32>} : memref<8x32xf32, #tpu.memory_space<vmem>>, vector<8x8xf32>,
    %100 = vector.extract_strided_slice %35 {offsets = [0, 24], sizes = [8, 8], strides = [1, 1]} : vector<8x32xbf16> to vector<8x8xbf16>
    %101 = vector.extract_strided_slice %37 {offsets = [0, 24], sizes = [8, 8], strides = [1, 1]} : vector<8x32xbf16> to vector<8x8xbf16>
    %102 = vector.extract_strided_slice %39 {offsets = [0, 24], sizes = [8, 8], strides = [1, 1]} : vector<8x32xbf16> to vector<8x8xbf16>
    %cst_42 = arith.constant dense<0.000000e+00> : vector<8x8xf32>
    %103 = tpu.matmul %100, %101, %cst_42 {dimension_numbers = #tpu.dot_dimension_numbers<[1], [1], [0], [0], [0, 0, 1, 0], [], []>} : vector<8x8xbf16>, vector<8x8xbf16>, vector<8x8xf32> -> vector<8x8xf32>
    %cst_43 = arith.constant dense<0xFF800000> : vector<8xf32>
    %104 = vector.multi_reduction <maximumf>, %103, %cst_43 [1] : vector<8x8xf32> to vector<8xf32>
    %105 = vector.shape_cast %104 : vector<8xf32> to vector<8x1xf32>
    %106 = vector.broadcast %105 : vector<8x1xf32> to vector<8x8xf32>
    %107 = arith.subf %103, %106 : vector<8x8xf32>
    %108 = math.exp %107 : vector<8x8xf32>
    %cst_44 = arith.constant dense<0.000000e+00> : vector<8xf32>
    %109 = vector.multi_reduction <add>, %108, %cst_44 [1] : vector<8x8xf32> to vector<8xf32>
    %110 = vector.shape_cast %109 : vector<8xf32> to vector<8x1xf32>
    %111 = tpu.reciprocal %110 {approx = true} : vector<8x1xf32> -> vector<8x1xf32>
    %112 = vector.broadcast %111 : vector<8x1xf32> to vector<8x8xf32>
    %113 = arith.mulf %108, %112 : vector<8x8xf32>
    %c0_45 = arith.constant 0 : index
    %c3 = arith.constant 3 : index
    %c0_46 = arith.constant 0 : index
    %c0_47 = arith.constant 0 : index
    %114 = vector.load %arg15[%c0_45, %c3, %c0_46, %c0_47] : memref<1x4x8x8xf32, #tpu.memory_space<vmem>>, vector<1x1x8x8xf32>
    %115 = vector.shape_cast %114 : vector<1x1x8x8xf32> to vector<8x8xf32>
    %116 = vector.shape_cast %113 : vector<8x8xf32> to vector<1x1x8x8xf32>
    tpu.vector_store %arg15[%c0_45, %c3, %c0_46, %c0_47], %116 {strides = array<i32>} : memref<1x4x8x8xf32, #tpu.memory_space<vmem>>, vector<1x1x8x8xf32>,
    %117 = arith.truncf %113 : vector<8x8xf32> to vector<8x8xbf16>
    %cst_48 = arith.constant dense<0.000000e+00> : vector<8x8xf32>
    %118 = tpu.matmul %117, %102, %cst_48 {dimension_numbers = #tpu.dot_dimension_numbers<[1], [0], [0], [1], [0, 0, 1, 1], [], []>} : vector<8x8xbf16>, vector<8x8xbf16>, vector<8x8xf32> -> vector<8x8xf32>
    %c0_49 = arith.constant 0 : index
    %c24 = arith.constant 24 : index
    %119 = vector.load %arg16[%c0_49, %c24] : memref<8x32xf32, #tpu.memory_space<vmem>>, vector<8x8xf32>
    tpu.vector_store %arg16[%c0_49, %c24], %118 {strides = array<i32>} : memref<8x32xf32, #tpu.memory_space<vmem>>, vector<8x8xf32>,
    %c0_50 = arith.constant 0 : index
    %c0_51 = arith.constant 0 : index
    %120 = vector.load %arg16[%c0_50, %c0_51] : memref<8x32xf32, #tpu.memory_space<vmem>>, vector<8x32xf32>
    %121 = arith.truncf %120 : vector<8x32xf32> to vector<8x32xbf16>
    %c0_52 = arith.constant 0 : index
    %c0_53 = arith.constant 0 : index
    %122 = vector.load %arg6[%c0_52, %c0_53] : memref<32x32xbf16, #tpu.memory_space<vmem>>, vector<32x32xbf16>
    %cst_54 = arith.constant dense<0.000000e+00> : vector<8x32xf32>
    %123 = tpu.matmul %121, %122, %cst_54 {dimension_numbers = #tpu.dot_dimension_numbers<[1], [0], [0], [1], [0, 0, 1, 1], [], []>} : vector<8x32xbf16>, vector<32x32xbf16>, vector<8x32xf32> -> vector<8x32xf32>
    %c0_55 = arith.constant 0 : index
    %c0_56 = arith.constant 0 : index
    %124 = vector.load %arg7[%c0_55, %c0_56] : memref<1x32xf32, #tpu.memory_space<vmem>>, vector<1x32xf32>
    %125 = vector.broadcast %124 : vector<1x32xf32> to vector<8x32xf32>
    %126 = arith.addf %123, %125 : vector<8x32xf32>
    %127 = arith.addf %126, %1 : vector<8x32xf32>
    %c0_57 = arith.constant 0 : index
    %c0_58 = arith.constant 0 : index
    %128 = vector.load %arg8[%c0_57, %c0_58] : memref<1x32xf32, #tpu.memory_space<vmem>>, vector<1x32xf32>
    %c0_59 = arith.constant 0 : index
    %c0_60 = arith.constant 0 : index
    %129 = vector.load %arg9[%c0_59, %c0_60] : memref<1x32xf32, #tpu.memory_space<vmem>>, vector<1x32xf32>
    %cst_61 = arith.constant dense<0.000000e+00> : vector<8xf32>
    %130 = vector.multi_reduction <add>, %127, %cst_61 [1] : vector<8x32xf32> to vector<8xf32>
    %131 = vector.shape_cast %130 : vector<8xf32> to vector<8x1xf32>
    %cst_62 = arith.constant 3.200000e+01 : f32
    %132 = vector.broadcast %cst_62 : f32 to vector<8x1xf32>
    %133 = arith.divf %131, %132 : vector<8x1xf32>
    %134 = vector.broadcast %133 : vector<8x1xf32> to vector<8x32xf32>
    %135 = arith.subf %127, %134 : vector<8x32xf32>
    %136 = arith.mulf %135, %135 : vector<8x32xf32>
    %cst_63 = arith.constant dense<0.000000e+00> : vector<8xf32>
    %137 = vector.multi_reduction <add>, %136, %cst_63 [1] : vector<8x32xf32> to vector<8xf32>
    %138 = vector.shape_cast %137 : vector<8xf32> to vector<8x1xf32>
    %cst_64 = arith.constant 3.200000e+01 : f32
    %139 = vector.broadcast %cst_64 : f32 to vector<8x1xf32>
    %140 = arith.divf %138, %139 : vector<8x1xf32>
    %141 = vector.broadcast %133 : vector<8x1xf32> to vector<8x32xf32>
    %142 = arith.subf %127, %141 : vector<8x32xf32>
    %cst_65 = arith.constant 9.99999997E-7 : f32
    %143 = vector.broadcast %cst_65 : f32 to vector<8x1xf32>
    %144 = arith.addf %140, %143 : vector<8x1xf32>
    %145 = math.rsqrt %144 : vector<8x1xf32>
    %146 = vector.broadcast %145 : vector<8x1xf32> to vector<8x32xf32>
    %147 = arith.mulf %142, %146 : vector<8x32xf32>
    %148 = vector.broadcast %128 : vector<1x32xf32> to vector<8x32xf32>
    %149 = arith.mulf %147, %148 : vector<8x32xf32>
    %150 = vector.broadcast %129 : vector<1x32xf32> to vector<8x32xf32>
    %151 = arith.addf %149, %150 : vector<8x32xf32>
    %152 = arith.truncf %151 : vector<8x32xf32> to vector<8x32xbf16>
    %c0_66 = arith.constant 0 : index
    %c0_67 = arith.constant 0 : index
    %153 = vector.load %arg10[%c0_66, %c0_67] : memref<32x64xbf16, #tpu.memory_space<vmem>>, vector<32x64xbf16>
    %cst_68 = arith.constant dense<0.000000e+00> : vector<8x64xf32>
    %154 = tpu.matmul %152, %153, %cst_68 {dimension_numbers = #tpu.dot_dimension_numbers<[1], [0], [0], [1], [0, 0, 1, 1], [], []>} : vector<8x32xbf16>, vector<32x64xbf16>, vector<8x64xf32> -> vector<8x64xf32>
    %c0_69 = arith.constant 0 : index
    %c0_70 = arith.constant 0 : index
    %155 = vector.load %arg11[%c0_69, %c0_70] : memref<1x64xf32, #tpu.memory_space<vmem>>, vector<1x64xf32>
    %156 = vector.broadcast %155 : vector<1x64xf32> to vector<8x64xf32>
    %157 = arith.addf %154, %156 : vector<8x64xf32>
    %cst_71 = arith.constant 5.000000e-01 : f32
    %158 = vector.broadcast %cst_71 : f32 to vector<8x64xf32>
    %159 = arith.mulf %158, %157 : vector<8x64xf32>
    %cst_72 = arith.constant 0.707106769 : f32
    %160 = vector.broadcast %cst_72 : f32 to vector<8x64xf32>
    %161 = arith.mulf %157, %160 : vector<8x64xf32>
    %162 = math.erf %161 : vector<8x64xf32>
    %cst_73 = arith.constant 1.000000e+00 : f32
    %163 = vector.broadcast %cst_73 : f32 to vector<8x64xf32>
    %164 = arith.addf %163, %162 : vector<8x64xf32>
    %165 = arith.mulf %159, %164 : vector<8x64xf32>
    %166 = arith.truncf %165 : vector<8x64xf32> to vector<8x64xbf16>
    %c0_74 = arith.constant 0 : index
    %c0_75 = arith.constant 0 : index
    %167 = vector.load %arg12[%c0_74, %c0_75] : memref<64x32xbf16, #tpu.memory_space<vmem>>, vector<64x32xbf16>
    %cst_76 = arith.constant dense<0.000000e+00> : vector<8x32xf32>
    %168 = tpu.matmul %166, %167, %cst_76 {dimension_numbers = #tpu.dot_dimension_numbers<[1], [0], [0], [1], [0, 0, 1, 1], [], []>} : vector<8x64xbf16>, vector<64x32xbf16>, vector<8x32xf32> -> vector<8x32xf32>
    %c0_77 = arith.constant 0 : index
    %c0_78 = arith.constant 0 : index
    %169 = vector.load %arg13[%c0_77, %c0_78] : memref<1x32xf32, #tpu.memory_space<vmem>>, vector<1x32xf32>
    %170 = vector.broadcast %169 : vector<1x32xf32> to vector<8x32xf32>
    %171 = arith.addf %168, %170 : vector<8x32xf32>
    %172 = arith.addf %171, %127 : vector<8x32xf32>
    %c0_79 = arith.constant 0 : index
    %c0_80 = arith.constant 0 : index
    %c0_81 = arith.constant 0 : index
    %173 = vector.load %arg14[%c0_79, %c0_80, %c0_81] : memref<1x8x32xf32, #tpu.memory_space<vmem>>, vector<1x8x32xf32>
    %174 = vector.shape_cast %173 : vector<1x8x32xf32> to vector<8x32xf32>
    %175 = vector.shape_cast %172 : vector<8x32xf32> to vector<1x8x32xf32>
    tpu.vector_store %arg14[%c0_79, %c0_80, %c0_81], %175 {strides = array<i32>} : memref<1x8x32xf32, #tpu.memory_space<vmem>>, vector<1x8x32xf32>,
    return
  }
  func.func @transform_0(%arg0: i32) -> (i32, i32, i32) {
    %c0_i32 = arith.constant 0 : i32
    %c0_i32_0 = arith.constant 0 : i32
    %c0_i32_1 = arith.constant 0 : i32
    return %arg0, %c0_i32, %c0_i32_0 : i32, i32, i32
  }
  func.func @transform_1(%arg0: i32) -> (i32, i32) {
    %c0_i32 = arith.constant 0 : i32
    %c0_i32_0 = arith.constant 0 : i32
    %c0_i32_1 = arith.constant 0 : i32
    return %c0_i32, %c0_i32_0 : i32, i32
  }
  func.func @transform_2(%arg0: i32) -> (i32, i32) {
    %c0_i32 = arith.constant 0 : i32
    %c0_i32_0 = arith.constant 0 : i32
    %c0_i32_1 = arith.constant 0 : i32
    return %c0_i32, %c0_i32_0 : i32, i32
  }
  func.func @transform_3(%arg0: i32) -> (i32, i32) {
    %c0_i32 = arith.constant 0 : i32
    %c0_i32_0 = arith.constant 0 : i32
    %c0_i32_1 = arith.constant 0 : i32
    return %c0_i32, %c0_i32_0 : i32, i32
  }
  func.func @transform_4(%arg0: i32) -> (i32, i32) {
    %c0_i32 = arith.constant 0 : i32
    %c0_i32_0 = arith.constant 0 : i32
    %c0_i32_1 = arith.constant 0 : i32
    return %c0_i32, %c0_i32_0 : i32, i32
  }
  func.func @transform_5(%arg0: i32) -> (i32, i32) {
    %c0_i32 = arith.constant 0 : i32
    %c0_i32_0 = arith.constant 0 : i32
    %c0_i32_1 = arith.constant 0 : i32
    return %c0_i32, %c0_i32_0 : i32, i32
  }
  func.func @transform_6(%arg0: i32) -> (i32, i32) {
    %c0_i32 = arith.constant 0 : i32
    %c0_i32_0 = arith.constant 0 : i32
    %c0_i32_1 = arith.constant 0 : i32
    return %c0_i32, %c0_i32_0 : i32, i32
  }
  func.func @transform_7(%arg0: i32) -> (i32, i32) {
    %c0_i32 = arith.constant 0 : i32
    %c0_i32_0 = arith.constant 0 : i32
    %c0_i32_1 = arith.constant 0 : i32
    return %c0_i32, %c0_i32_0 : i32, i32
  }
  func.func @transform_8(%arg0: i32) -> (i32, i32) {
    %c0_i32 = arith.constant 0 : i32
    %c0_i32_0 = arith.constant 0 : i32
    %c0_i32_1 = arith.constant 0 : i32
    return %c0_i32, %c0_i32_0 : i32, i32
  }
  func.func @transform_9(%arg0: i32) -> (i32, i32) {
    %c0_i32 = arith.constant 0 : i32
    %c0_i32_0 = arith.constant 0 : i32
    %c0_i32_1 = arith.constant 0 : i32
    return %c0_i32, %c0_i32_0 : i32, i32
  }
  func.func @transform_10(%arg0: i32) -> (i32, i32) {
    %c0_i32 = arith.constant 0 : i32
    %c0_i32_0 = arith.constant 0 : i32
    %c0_i32_1 = arith.constant 0 : i32
    return %c0_i32, %c0_i32_0 : i32, i32
  }
  func.func @transform_11(%arg0: i32) -> (i32, i32) {
    %c0_i32 = arith.constant 0 : i32
    %c0_i32_0 = arith.constant 0 : i32
    %c0_i32_1 = arith.constant 0 : i32
    return %c0_i32, %c0_i32_0 : i32, i32
  }
  func.func @transform_12(%arg0: i32) -> (i32, i32) {
    %c0_i32 = arith.constant 0 : i32
    %c0_i32_0 = arith.constant 0 : i32
    %c0_i32_1 = arith.constant 0 : i32
    return %c0_i32, %c0_i32_0 : i32, i32
  }
  func.func @transform_13(%arg0: i32) -> (i32, i32, i32) {
    %c0_i32 = arith.constant 0 : i32
    %c0_i32_0 = arith.constant 0 : i32
    %c0_i32_1 = arith.constant 0 : i32
    return %arg0, %c0_i32, %c0_i32_0 : i32, i32, i32
  }
  func.func @transform_14(%arg0: i32) -> (i32, i32, i32, i32) {
    %c0_i32 = arith.constant 0 : i32
    %c0_i32_0 = arith.constant 0 : i32
    %c0_i32_1 = arith.constant 0 : i32
    %c0_i32_2 = arith.constant 0 : i32
    return %arg0, %c0_i32, %c0_i32_0, %c0_i32_1 : i32, i32, i32, i32
  }
}

</mosaic_0001>

<bundles_post_ra>
// kernel: tpu_custom_call.1
= control target key start
LH: loop header
LB: loop body
LE: loop exit
PB: predicated region body
PF: predicated region fallthrough
CT: control target
= control target key end

     0   :  { %s2549_s0 = inlined_call_operand.vmem [shape: f32[2,8,32], index: 0, kind: input, shape index: {}]   ;;  %s2550_s1 = inlined_call_operand.vmem [shape: f32[1,32], index: 1, kind: input, shape index: {}]   ;;  %s2551_s2 = inlined_call_operand.vmem [shape: f32[1,32], index: 2, kind: input, shape index: {}]   ;;  %s2552_s3 = inlined_call_operand.vmem [shape: bf16[32,96], index: 3, kind: input, shape index: {}]   ;;  %s2553_s4 = inlined_call_operand.hbm [shape: f32[1,96], index: 4, kind: input, shape index: {}]   ;;  %s2554_s5 = inlined_call_operand.vmem [shape: bf16[32,32], index: 5, kind: input, shape index: {}]   ;;  %s2555_s6 = inlined_call_operand.hbm [shape: f32[1,32], index: 6, kind: input, shape index: {}]   ;;  %s2556_s7 = inlined_call_operand.hbm [shape: f32[1,32], index: 7, kind: input, shape index: {}]   ;;  %s2557_s8 = inlined_call_operand.hbm [shape: f32[1,32], index: 8, kind: input, shape index: {}]   ;;  %s2558_s9 = inlined_call_operand.vmem [shape: bf16[32,64], index: 9, kind: input, shape index: {}]   ;;  %s2559_s10 = inlined_call_operand.vmem [shape: f32[1,64], index: 10, kind: input, shape index: {}]   ;;  %s2560_s11 = inlined_call_operand.vmem [shape: bf16[64,32], index: 11, kind: input, shape index: {}]   ;;  %s2561_s12 = inlined_call_operand.vmem [shape: f32[1,32], index: 12, kind: input, shape index: {}]   ;;  %s2562_s13 = inlined_call_operand.hbm [shape: f32[2,8,32], index: 13, kind: output, shape index: {0}]   ;;  %s2563_s14 = inlined_call_operand.hbm [shape: f32[2,4,8,8], index: 14, kind: output, shape index: {1}]  }
   0x1   :  { %2574 = sst [smem:[#allocation25_spill]] %s2549_s0 }
   0x2   :  { %2575 = sst [smem:[#allocation26_spill]] %s2561_s12 }
   0x3   :  { %2576 = sst [smem:[#allocation27_spill]] %s2562_s13 }
   0x4   :  { %20 = vsyncpa [#allocation4], 0 }
   0x5   :  { %21 = vsyncpa [#allocation7], 0 }
   0x6   :  { %22 = vsyncpa [#allocation10], 0 }
   0x7   :  { %23 = vsyncpa [#allocation5], 0 }
   0x8   :  { %25 = vsyncpa [#allocation5 + $0x1], 0 }
   0x9   :  { %26 = vsyncpa [#allocation13], 0 }
   0xa   :  { %28 = vsyncpa [#allocation13 + $0x1], 0  ;;  %s2141_s29 = smov 0   ;;  %s2143_s30 = smov 0  }
   0xb   :  { %s2145_s15 = smov 0   ;;  %s2147_s16 = smov 0  }
   0xc LB: > { %2577 = sst [smem:[#allocation19_spill]] %s2029_s29  ;;  %s2162_s17 = sadd.s32 4294967295, %s2041_s16   ;;  %s2041_s16 = sphi %s2147_s16, %s2603_s16   ;;  %s2037_s15 = sphi %s2145_s15, %s2605_s15   ;;  %s2033_s30 = sphi %s2143_s30, %s2607_s30   ;;  %s2029_s29 = sphi %s2141_s29, %s2606_s29  }
   0xd   : > { %2578 = sst [smem:[#allocation20_spill]] %s2037_s15  ;;  %s1519_s18 = sadd.s32 4294967294, %s2041_s16  }
   0xe   : > { %2579 = sst [smem:[#allocation21_spill]] %s2041_s16  ;;  %s2166_s19 = sadd.s32 1, %s2041_s16  }
   0xf   : > { %2580 = sst [smem:[#allocation22_spill]] %s2166_s19  ;;  %s319_s20 = sadd.s32 1, %s2037_s15 }
  0x10   : > { %s316_s21 = ssub.s32 %s2041_s16, %s2166_s19  ;;  %p329_p0 = scmp.ne.s32.totalorder %s2037_s15, %s2033_s30 }
  0x11   : > { %p317_p1 = scmp.eq.s32.totalorder %s316_s21, 0  ;;  %p330_p2 = scmp.eq.s32.totalorder %s2162_s17, 1 }
  0x12   : > { %p335_p3 = scmp.ne.s32.totalorder %s2033_s30, %s2029_s29  ;;  %p336_p4 = scmp.eq.s32.totalorder %s1519_s18, 1 }
  0x13   : > { %s2177_s22 = scalar_select %p317_p1, %s2037_s15, %s319_s20  }
  0x14   : > { %p2179_p5 = por %p330_p2, %p329_p0  ;;  %p2183_p6 = por %p336_p4, %p335_p3 }
  0x15   : > { %2581 = sst [smem:[#allocation23_spill]] %s2177_s22  ;;  %p1520_p7 = scmp.ge.s32.totalorder %s2041_s16, 1 }
  0x16   : > { %s2582_s23 = scalar_select %p2179_p5, 1, 0 }
  0x17   : > { %s2583_s24 = scalar_select %p2183_p6, 1, 0 }
  0x18   : > { %p369_p8 = scmp.lt.s32.totalorder %s2041_s16, 3  ;;  %p2570_p9 = scmp.eq.s32.totalorder %s2162_s17, 0 }
  0x19   : > { %2584 = sst [smem:[#allocation24_spill]] %s2583_s24  ;;  %s2043_s26 = smov [#allocation6]  }
  0x1a   : > { %p2190_p10 = pnand %p1520_p7, %p369_p8  ;;  %s405_s27 = sshll.u32 %s2043_s26, 4  ;;  %s406_s27 = int_to_ptr.vmem [resolvable:$true] %s405_s27 }
  0x1b   : > { %s2044_s28 = smov [#allocation3]   ;;  %s2045_s21 = smov [#allocation8]  }
  0x1c   : > { %s2585_s25 = scalar_select %p2190_p10, 1, 0 }
  0x1d   : > { %p1709_p11 = pneg %p2190_p10  ;;  %s391_s18 = sshll.u32 %s2044_s28, 4  ;;  %s2202_s18 = int_to_ptr.vmem [resolvable:$true] %s391_s18 }
  0x1e   : > { %s416_s22 = sshll.u32 %s2045_s21, 4  ;;  %s1823_s26 = scalar_lea.hbm %s2555_s6, 16  ;;  %s2204_s22 = int_to_ptr.vmem [resolvable:$true] %s416_s22 }
  0x1f   : > { %p2198_p12 = pnand %p2570_p9, %p1709_p11  ;;  %p1824_p13 = scmp.ne.s32.totalorder %s2555_s6, %s1823_s26 }
  0x20   : > { %p1830_p3 = scmp.lt.u32.totalorder %s1823_s26, %s2555_s6 }
  0x21   : > { %p2214_p0 = pneg %p2198_p12 }
  0x23   : > { %p1826_p1 = pnand %p2214_p0, %p1824_p13 }
  0x25   : > { %p1827_p2 = pneg %p1826_p1 }
  0x27   : > { %p1832_p4 = pnand %p1830_p3, %p1827_p2 }
  0x29   : > { %1835 = shalt.err (!%p1832_p4)
}
  0x2a   : > { %s1836_s15 = scalar_lea.vmem %s406_s27, 16  ;;  %s1843_s29 = scalar_lea.vmem %s406_s27, 32 }
  0x2b   : > { %p1837_p7 = scmp.ne.s32.totalorder %s406_s27, %s1836_s15  ;;  %p1844_p9 = scmp.lt.s32.totalorder %s406_s27, %s406_s27 }
  0x2c   : > { %p1845_p6 = scmp.lt.s32.totalorder %s1843_s29, %s1836_s15 }
  0x2d   : > { %p1839_p8 = pnand %p1837_p7, %p2214_p0 }
  0x2e   : > { %p1846_p5 = por %p1845_p6, %p1844_p9 }
  0x2f   : > { %p1840_p11 = pneg %p1839_p8 }
  0x31   : > { %p1847_p10 = pnand %p1846_p5, %p1840_p11 }
  0x33   : > { %1850 = shalt.err (!%p1847_p10)
}
  0x34   : > { %1715 = dma.hbm_to_vmem [thread:$0]  (!%p2198_p12), %s2555_s6, 16, %s406_s27, [#allocation7]  }
  0x35   : > { %s1851_s21 = scalar_lea.hbm %s2553_s4, 16 }
  0x36   : > { %p1852_p13 = scmp.ne.s32.totalorder %s2553_s4, %s1851_s21  ;;  %p1858_p5 = scmp.lt.u32.totalorder %s1851_s21, %s2553_s4 }
  0x38   : > { %p1854_p1 = pnand %p1852_p13, %p2214_p0 }
  0x3a   : > { %p1855_p6 = pneg %p1854_p1 }
  0x3c   : > { %p1860_p9 = pnand %p1858_p5, %p1855_p6 }
  0x3e   : > { %1863 = shalt.err (!%p1860_p9)
}
  0x3f   : > { %s1864_s27 = scalar_lea.vmem %s2202_s18, 16  ;;  %s1871_s12 = scalar_lea.vmem %s2202_s18, 32 }
  0x40   : > { %p1865_p10 = scmp.ne.s32.totalorder %s2202_s18, %s1864_s27  ;;  %p1872_p4 = scmp.lt.s32.totalorder %s2202_s18, %s2202_s18 }
  0x41   : > { %p1873_p7 = scmp.lt.s32.totalorder %s1871_s12, %s1864_s27 }
  0x42   : > { %p1867_p2 = pnand %p1865_p10, %p2214_p0 }
  0x43   : > { %p1874_p8 = por %p1873_p7, %p1872_p4 }
  0x44   : > { %p1868_p3 = pneg %p1867_p2 }
  0x46   : > { %p1875_p11 = pnand %p1874_p8, %p1868_p3 }
  0x48   : > { %1878 = shalt.err (!%p1875_p11)
}
  0x49   : > { %1712 = dma.hbm_to_vmem [thread:$0]  (!%p2198_p12), %s2553_s4, 16, %s2202_s18, [#allocation4]  }
  0x4a   : > { %s1879_s26 = scalar_lea.hbm %s2556_s7, 16 }
  0x4b   : > { %p1880_p13 = scmp.ne.s32.totalorder %s2556_s7, %s1879_s26  ;;  %p1886_p5 = scmp.lt.u32.totalorder %s1879_s26, %s2556_s7 }
  0x4d   : > { %p1882_p1 = pnand %p1880_p13, %p2214_p0 }
  0x4f   : > { %p1883_p6 = pneg %p1882_p1 }
  0x51   : > { %p1888_p9 = pnand %p1886_p5, %p1883_p6 }
  0x53   : > { %1891 = shalt.err (!%p1888_p9)
}
  0x54   : > { %s1892_s18 = scalar_lea.vmem %s2204_s22, 16  ;;  %s1899_s12 = scalar_lea.vmem %s2204_s22, 32 }
  0x55   : > { %p1893_p10 = scmp.ne.s32.totalorder %s2204_s22, %s1892_s18  ;;  %p1900_p4 = scmp.lt.s32.totalorder %s2204_s22, %s2204_s22 }
  0x56   : > { %p1901_p7 = scmp.lt.s32.totalorder %s1899_s12, %s1892_s18 }
  0x57   : > { %p1895_p2 = pnand %p1893_p10, %p2214_p0 }
  0x58   : > { %p1902_p8 = por %p1901_p7, %p1900_p4 }
  0x59   : > { %p1896_p3 = pneg %p1895_p2 }
  0x5b   : > { %p1903_p11 = pnand %p1902_p8, %p1896_p3 }
  0x5d   : > { %1906 = shalt.err (!%p1903_p11)
}
  0x5e   : > { %1718 = dma.hbm_to_vmem [thread:$0]  (!%p2198_p12), %s2556_s7, 16, %s2204_s22, [#allocation7]  }
  0x5f   : > { %s2046_s24 = smov [#allocation9]   ;;  %s1907_s15 = scalar_lea.hbm %s2557_s8, 16 }
  0x60   : > { %s427_s16 = sshll.u32 %s2046_s24, 4  ;;  %p1908_p13 = scmp.ne.s32.totalorder %s2557_s8, %s1907_s15  ;;  %s428_s16 = int_to_ptr.vmem [resolvable:$true] %s427_s16 }
  0x61   : > { %p1914_p5 = scmp.lt.u32.totalorder %s1907_s15, %s2557_s8 }
  0x62   : > { %p1910_p1 = pnand %p1908_p13, %p2214_p0 }
  0x64   : > { %p1911_p6 = pneg %p1910_p1 }
  0x66   : > { %p1916_p9 = pnand %p1914_p5, %p1911_p6 }
  0x68   : > { %1919 = shalt.err (!%p1916_p9)
}
  0x69   : > { %s1920_s22 = scalar_lea.vmem %s428_s16, 16  ;;  %s1927_s13 = scalar_lea.vmem %s428_s16, 32 }
  0x6a   : > { %p1921_p10 = scmp.ne.s32.totalorder %s428_s16, %s1920_s22  ;;  %p1928_p4 = scmp.lt.s32.totalorder %s428_s16, %s428_s16 }
  0x6b   : > { %p1929_p7 = scmp.lt.s32.totalorder %s1927_s13, %s1920_s22 }
  0x6c   : > { %p1923_p2 = pnand %p1921_p10, %p2214_p0 }
  0x6d   : > { %p1930_p8 = por %p1929_p7, %p1928_p4 }
  0x6e   : > { %p1924_p3 = pneg %p1923_p2 }
  0x70   : > { %p1931_p11 = pnand %p1930_p8, %p1924_p3 }
  0x72   : > { %1934 = shalt.err (!%p1931_p11)
}
  0x73   : > { %1721 = dma.hbm_to_vmem [thread:$0]  (!%p2198_p12), %s2557_s8, 16, %s428_s16, [#allocation10]  }
  0x74   : > { %p2588_p13 = scmp.ne.s32.totalorder %s2585_s25, 0 }
  0x75   : > { %p2589_p1 = scmp.eq.s32.totalorder (!%p2588_p13), %s2162_s17, 0 }
  0x76   : > { %459 = sbr.rel (%p2588_p13) target bundleno = 2715 (0xa9b), region = 72 }
  0x7d   : > { %2008 = dma.done.wait (%p2589_p1), [#allocation4], 16   ;;  %p2590_p0 = pmov %p2589_p1 }
  0x7f   : > { %2010 = vsyncadd (%p2590_p0), [#allocation4], 4294967280  ;;  %p2591_p6 = pmov %p2590_p0 }
  0x80   : > { %p2592_p5 = pmov %p2590_p0 }
  0x81   : > { %2012 = dma.done.wait (%p2591_p6), [#allocation7], 32  }
  0x82   : > { %2014 = vsyncadd (%p2592_p5), [#allocation7], 4294967264  ;;  %p2593_p9 = pmov %p2590_p0 }
  0x83   : > { %p2594_p12 = pmov %p2590_p0 }
  0x84   : > { %2016 = dma.done.wait (%p2593_p9), [#allocation10], 16  }
  0x85   : > { %2018 = vsyncadd (%p2594_p12), [#allocation10], 4294967280  ;;  %p521_p10 = scmp.lt.s32.totalorder %s2162_s17, 1  ;;  %s2595_s0 = sld [smem:[#allocation25_spill]]  ;;  %vm529_vm0 = vcmask 261120   ;;  %v1791_v7 = vld [vmem:[%s2552_s3] sm:$0xff]  }
  0x86   : > { %v2047_v8 = vmov 0.0   ;;  %vm2048_vm1 = vmmov 0   ;;  %v1792_v9 = vld [vmem:[%s2552_s3 + $0x8] sm:$0xff]   ;;  %v1534_v14 = vld [vmem:[%s2550_s1] ss:$0 sm:$0xff]  ;;  %s2049_s19 = smov 96  }
  0x87   : > { %s522_s25 = scalar_select %p521_p10, %s2162_s17, 1  ;;  %1605 = vmatprep.subr.bf16.mxu0 %v2047_v8  ;;  %1609 = vmatprep.mubr.msk.bf16.mxu0 %vm2048_vm1, %v2047_v8  ;;  %v1535_v16 = vld [vmem:[%s2551_s2] ss:$0 sm:$0xff]  ;;  %v1536_v20 = vld [vmem:[#allocation3] ss:$0 sm:$0xff]  ;;  %vm631_vm2 = vcmask 64512  }
  0x88   : > { %1606 = vmatpush3.bf16.msra.mxu0 %v1791_v7  ;;  %1613 = vmatprep.subr.bf16.mxu1 %v2047_v8  ;;  %s2050_s24 = smov 120   ;;  %s2053_s28 = smov 112   ;;  %vm696_vm3 = vcmask 1043456   ;;  %vm858_vm4 = vcmask 130112   ;;  %vm976_vm5 = vcmask 195712   ;;  %vm1094_vm6 = vcmask 261312  }
  0x89   : > { %s1533_s20 = sshll.u32 %s522_s25, 3  ;;  %1607 = vmatprep.subr.bf16.mxu0 %v2047_v8  ;;  %1615 = vmatprep.mubr.msk.bf16.mxu1 %vm2048_vm1, %v2047_v8  ;;  %s2051_s25 = smov 88   ;;  %vm1306_vm7 = vcmask 523264  }
  0x8a   : > { %s2054_s16 = smov 72   ;;  %s2056_s21 = smov 64  }
  0x8b   : > { %s524_s26 = scalar_lea.vmem %s2595_s0, %s1533_s20  ;;  %s2052_s20 = smov 80  }
  0x8c   : > { %v2315_v0 = vld [vmem:[%s524_s26] sm:$0xff]  ;;  %1608 = vmatpush3.bf16.msra.mxu0 %v1792_v9  ;;  %s2055_s26 = smov 104   ;;  %s2057_s15 = smov 56  }
  0x8d   : > { %v530_v1 = vsel %vm529_vm0, %v2315_v0, 0.0  ;;  %1619 = vmatprep.subr.bf16.mxu0 %v2047_v8  ;;  %s2058_s29 = smov 48   ;;  %s2059_s27 = smov 40  }
  0x8e   : > { %531 = vadd.xlane.f32.xlu0 %v530_v1  ;;  %s2384_s18 = sand.u32 1, %s2033_s30   ;;  %s2060_s13 = smov 8  }
  0x8f   : > { %s1532_s12 = sshll.u32 %s2384_s18, 5  ;;  %p2596_p3 = scmp.ne.s32.totalorder %s2582_s23, 0 }
  0x90   : > { %s2388_s22 = scalar_lea.vmem [#allocation12], %s1532_s12 }
 0x11b   : > { %v532_v2 = vpop.xlane.xlu0 %531 }
 0x11c   : > { %v534_v3 = vmul.f32 0.03125, %v532_v2 }
 0x11e   : > { %v535_v4 = vsub.f32 %v2315_v0, %v534_v3 }
 0x120   : > { %v536_v5 = vmul.f32 %v535_v4, %v535_v4 }
 0x122   : > { %v537_v6 = vsel %vm529_vm0, %v536_v5, 0.0 }
 0x123   : > { %538 = vadd.xlane.f32.xlu0 %v537_v6 }
 0x1b0   : > { %v539_v10 = vpop.xlane.xlu0 %538 }
 0x1b1   : > { %v540_v11 = vmul.f32 0.03125, %v539_v10 }
 0x1b3   : > { %v541_v12 = vadd.f32 1e-06, %v540_v11 }
 0x1b5   : > { %1801 = vrsqrt.f32 %v541_v12 }
 0x1bf   : > { %v1802_v13 = vpop.eup %1801 }
 0x1c0   : > { %v543_v15 = vmul.f32 %v1802_v13, %v535_v4 }
 0x1c2   : > { %v550_v17 = vmul.f32 %v1534_v14, %v543_v15 }
 0x1c4   : > { %v557_v18 = vadd.f32 %v1535_v16, %v550_v17 }
 0x1c6   : > { %v558_v19 = vpack.c.bf16 %v557_v18, %v557_v18 }
 0x1c8   : > { %1610 = vmatmul.mubr.msk.bf16.vlgmr.msra.gmra.mrb[0].mxu0 %vm529_vm0, %v558_v19 }
 0x1c9   : > { %1621 = vmatprep.mubr.msk.bf16.mxu0 %vm2048_vm1, %v2047_v8 }
 0x29b   : > { %v619_v21 = vpop.f32.mrb[0].mxu0 }
 0x29c   : > { %v620_v22 = vadd.f32 %v1536_v20, %v619_v21  ;;  %v1611_v23 = vpop.f32.mrb[1].mxu0 }
 0x29d   : > { %v622_v24 = vpop.f32.mrb[2].mxu0 }
 0x29e   : > { %v625_v25 = vmul.f32 0.35355338, %v620_v22  ;;  %v2344_v26 = vpack.c.bf16 %v620_v22, %v620_v22  ;;  %v1612_v27 = vpop.f32.mrb[3].mxu0 }
 0x2a0   : > { %v626_v28 = vpack.c.bf16 %v625_v25, %v625_v25  ;;  %629 = vrot.lane.b32.xlu1 %v2344_v26, %s2049_s19 }
 0x2a2   : > { %742 = vrot.lane.b32.xlu0 %v626_v28, %s2050_s24  ;;  %s1358_s24 = scalar_lea.sflag [#allocation13], %s2384_s18 }
 0x2a4   : > { %744 = vrot.lane.b32.xlu1 %v2344_v26, %s2051_s25 }
 0x2a8   : > { %862 = vrot.lane.b32.xlu1 %v2344_v26, %s2052_s20  ;;  %s2063_s20 = smov [#allocation12]  }
 0x2ac   : > { %860 = vrot.lane.b32.xlu1 %v626_v28, %s2053_s28  ;;  %s2061_s28 = smov 16  }
 0x2b0   : > { %980 = vrot.lane.b32.xlu1 %v2344_v26, %s2054_s16  ;;  %s2062_s16 = smov 24  }
 0x2b4   : > { %978 = vrot.lane.b32.xlu1 %v626_v28, %s2055_s26 }
 0x312   : > { %v630_v29 = vpop.permute.xlu1 %629 }
 0x313   : > { %v636_v30 = vsel %vm631_vm2, %v630_v29, 0 }
 0x314   : > { %1614 = vmatpush3.bf16.xpose.msra.mxu1 %v636_v30  ;;  %v743_v34 = vpop.permute.xlu0 %742 }
 0x315   : > { %1625 = vmatprep.subr.bf16.mxu1 %v2047_v8 }
 0x316   : > { %v745_v31 = vpop.permute.xlu1 %744 }
 0x317   : > { %v750_v32 = vsel %vm631_vm2, %v745_v31, 0 }
 0x31a   : > { %v863_v33 = vpop.permute.xlu1 %862 }
 0x31b   : > { %1616 = vmatmul.mubr.msk.bf16.vlgmr.msra.gmra.mrb[0].mxu1 %vm631_vm2, %v626_v28  ;;  %v868_v36 = vsel %vm631_vm2, %v863_v33, 0 }
 0x31c   : > { %1626 = vmatpush3.bf16.xpose.msra.mxu1 %v750_v32  ;;  %1627 = vmatprep.mubr.msk.bf16.mxu1 %vm2048_vm1, %v2047_v8 }
 0x31d   : > { %1637 = vmatprep.subr.bf16.mxu1 %v2047_v8 }
 0x31e   : > { %v861_v35 = vpop.permute.xlu1 %860 }
 0x322   : > { %v981_v37 = vpop.permute.xlu1 %980 }
 0x323   : > { %1628 = vmatmul.mubr.msk.bf16.vlgmr.msra.gmra.mrb[4].mxu1 %vm631_vm2, %v743_v34  ;;  %v986_v38 = vsel %vm631_vm2, %v981_v37, 0 }
 0x324   : > { %1638 = vmatpush3.bf16.xpose.msra.mxu1 %v868_v36  ;;  %1639 = vmatprep.mubr.msk.bf16.mxu1 %vm2048_vm1, %v2047_v8 }
 0x325   : > { %1649 = vmatprep.subr.bf16.mxu1 %v2047_v8 }
 0x326   : > { %v979_v39 = vpop.permute.xlu1 %978 }
 0x32b   : > { %1640 = vmatmul.mubr.msk.bf16.vlgmr.msra.gmra.mrb[8].mxu1 %vm631_vm2, %v861_v35 }
 0x32c   : > { %1650 = vmatpush3.bf16.xpose.msra.mxu1 %v986_v38  ;;  %1651 = vmatprep.mubr.msk.bf16.mxu1 %vm2048_vm1, %v2047_v8 }
 0x32d   : > { %1661 = vmatprep.subr.bf16.mxu1 %v2047_v8 }
 0x333   : > { %1652 = vmatmul.mubr.msk.bf16.vlgmr.msra.gmra.mrb[12].mxu1 %vm631_vm2, %v979_v39 }
 0x334   : > { %1665 = vmatprep.mubr.msk.bf16.mxu1 %vm2048_vm1, %v2047_v8 }
 0x3ee   : > { %v672_v40 = vpop.f32.mrb[0].mxu1 }
 0x3ef   : > { %v1617_v41 = vpop.f32.mrb[1].mxu1  ;;  %v678_v42 = vsel %vm631_vm2, %v672_v40, -inf }
 0x3f0   : > { %679 = vmax.xlane.f32.xlu1 %v678_v42  ;;  %v675_v43 = vpop.f32.mrb[2].mxu1 }
 0x3f1   : > { %v1618_v44 = vpop.f32.mrb[3].mxu1 }
 0x3f6   : > { %v786_v45 = vpop.f32.mrb[4].mxu1 }
 0x3f7   : > { %v1629_v46 = vpop.f32.mrb[5].mxu1  ;;  %v792_v47 = vsel %vm631_vm2, %v786_v45, -inf }
 0x3f8   : > { %793 = vmax.xlane.f32.xlu0 %v792_v47  ;;  %v789_v48 = vpop.f32.mrb[6].mxu1 }
 0x3f9   : > { %v1630_v49 = vpop.f32.mrb[7].mxu1 }
 0x3fe   : > { %v904_v50 = vpop.f32.mrb[8].mxu1 }
 0x3ff   : > { %v1641_v51 = vpop.f32.mrb[9].mxu1  ;;  %v910_v52 = vsel %vm631_vm2, %v904_v50, -inf }
 0x400   : > { %911 = vmax.xlane.f32.xlu1 %v910_v52  ;;  %v907_v53 = vpop.f32.mrb[10].mxu1  ;;  %v1794_v51 = vld [vmem:[%s2554_s5 + $0x8] sm:$0xff]  }
 0x401   : > { %v1642_v54 = vpop.f32.mrb[11].mxu1 }
 0x406   : > { %v1022_v55 = vpop.f32.mrb[12].mxu1 }
 0x407   : > { %v1653_v56 = vpop.f32.mrb[13].mxu1  ;;  %v1028_v57 = vsel %vm631_vm2, %v1022_v55, -inf }
 0x408   : > { %1029 = vmax.xlane.f32.xlu0 %v1028_v57  ;;  %v1025_v58 = vpop.f32.mrb[14].mxu1 }
 0x409   : > { %v1654_v59 = vpop.f32.mrb[15].mxu1 }
 0x47d   : > { %v680_v60 = vpop.xlane.xlu1 %679 }
 0x47e   : > { %v681_v61 = vsub.f32 %v672_v40, %v680_v60 }
 0x480   : > { %v682_v62 = vmul.f32 1.442695, %v681_v61 }
 0x482   : > { %1803 = vpow2.f32 %v682_v62 }
 0x485   : > { %v794_v63 = vpop.xlane.xlu0 %793 }
 0x486   : > { %v795_v1 = vsub.f32 %v786_v45, %v794_v63 }
 0x488   : > { %v796_v2 = vmul.f32 1.442695, %v795_v1 }
 0x48a   : > { %1805 = vpow2.f32 %v796_v2  ;;  %v1551_v2 = vld [vmem:[#allocation6] ss:$0 sm:$0xff] }
 0x48c   : > { %v1804_v3 = vpop.eup %1803 }
 0x48d   : > { %v684_v4 = vsel %vm631_vm2, %v1804_v3, 0.0  ;;  %v912_v13 = vpop.xlane.xlu1 %911 }
 0x48e   : > { %685 = vadd.xlane.f32.xlu1 %v684_v4  ;;  %v913_v14 = vsub.f32 %v904_v50, %v912_v13  ;;  %v1793_v50 = vld [vmem:[%s2554_s5] sm:$0xff]  }
 0x48f   : > { %1662 = vmatpush3.bf16.msra.mxu1 %v1793_v50 }
 0x490   : > { %v914_v15 = vmul.f32 1.442695, %v913_v14  ;;  %1663 = vmatprep.subr.bf16.mxu1 %v2047_v8 }
 0x493   : > { %1664 = vmatpush3.bf16.msra.mxu1 %v1794_v51 }
 0x494   : > { %v1806_v5 = vpop.eup %1805  ;;  %1677 = vmatprep.subr.bf16.mxu1 %v2047_v8 }
 0x495   : > { %v1030_v6 = vpop.xlane.xlu0 %1029  ;;  %v798_v7 = vsel %vm631_vm2, %v1806_v5, 0.0 }
 0x496   : > { %v1031_v9 = vsub.f32 %v1022_v55, %v1030_v6  ;;  %799 = vadd.xlane.f32.xlu0 %v798_v7 }
 0x498   : > { %v1032_v10 = vmul.f32 1.442695, %v1031_v9 }
 0x49a   : > { %1807 = vpow2.f32 %v1032_v10 }
 0x49b   : > { %1809 = vpow2.f32 %v914_v15 }
 0x49f   : > { %691 = vrot.lane.b32.xlu1 %v2344_v26, %s2056_s21 }
 0x4a4   : > { %v1808_v11 = vpop.eup %1807 }
 0x4a5   : > { %v1034_v12 = vsel %vm631_vm2, %v1808_v11, 0.0  ;;  %v1810_v16 = vpop.eup %1809 }
 0x4a6   : > { %1035 = vadd.xlane.f32.xlu0 %v1034_v12  ;;  %v916_v17 = vsel %vm631_vm2, %v1810_v16, 0.0 }
 0x4bc   : > { %806 = vrot.lane.b32.xlu0 %v2344_v26, %s2057_s15  ;;  %s1384_s15 = sshll.u32 %s2388_s22, 4  ;;  %s2464_s15 = int_to_ptr.vmem [resolvable:$true] %s1384_s15 }
 0x4bd   : > { %s1935_s25 = scalar_lea.vmem %s2464_s15, 512 }
 0x4be   : > { %p1936_p2 = scmp.ne.s32.totalorder %s2464_s15, %s1935_s25 }
 0x4c0   : > { %p1937_p4 = pnand %p1936_p2, %p2596_p3 }
 0x4c2   : > { %p1938_p7 = pneg %p1937_p4 }
 0x4c3   : > { %917 = vadd.xlane.f32.xlu1 %v916_v17 }
 0x4d4   : > { %924 = vrot.lane.b32.xlu1 %v2344_v26, %s2058_s29  ;;  %s1574_s29 = sshll.u32 %s2162_s17, 9 }
 0x4d5   : > { %s2469_s19 = scalar_lea.hbm %s2563_s14, %s1574_s29 }
 0x4d8   : > { %1042 = vrot.lane.b32.xlu1 %v2344_v26, %s2059_s27 }
 0x51b   : > { %v686_v18 = vpop.xlane.xlu1 %685 }
 0x51c   : > { %1811 = vrcp.f32 %v686_v18 }
 0x51f   : > { %v692_v19 = vpop.permute.xlu1 %691 }
 0x520   : > { %v698_v20 = vsel %vm696_vm3, %v692_v19, 0 }
 0x521   : > { %1620 = vmatpush3.bf16.msra.mxu0 %v698_v20 }
 0x522   : > { %1631 = vmatprep.subr.bf16.mxu0 %v2047_v8 }
 0x523   : > { %v800_v21 = vpop.xlane.xlu0 %799 }
 0x524   : > { %1813 = vrcp.f32 %v800_v21  ;;  %v1555_v21 = vld [vmem:[#allocation8] ss:$0 sm:$0xff] }
 0x526   : > { %v1812_v22 = vpop.eup %1811 }
 0x527   : > { %v688_v23 = vmul.f32 %v1812_v22, %v1804_v3 }
 0x529   : > { %v690_v24 = vpack.c.bf16 %v688_v23, %v688_v23  ;;  %689 = vst.msk [vmem:[%s2388_s22] sm:$0xff] %vm631_vm2, %v688_v23  ;;  %v1556_v23 = vld [vmem:[#allocation9] ss:$0 sm:$0xff] }
 0x52b   : > { %1622 = vmatmul.mubr.msk.bf16.vlgmr.msra.gmra.mrb[4].mxu0 %vm631_vm2, %v690_v24 }
 0x52c   : > { %1633 = vmatprep.mubr.msk.bf16.mxu0 %vm2048_vm1, %v2047_v8 }
 0x52e   : > { %v1814_v25 = vpop.eup %1813 }
 0x52f   : > { %v802_v26 = vmul.f32 %v1814_v25, %v1806_v5 }
 0x531   : > { %1543 = vst.msk [vmem:[%s2388_s22 + $0x8] sm:$0xff] %vm631_vm2, %v802_v26  ;;  %v805_v30 = vpack.c.bf16 %v802_v26, %v802_v26 }
 0x533   : > { %v1036_v27 = vpop.xlane.xlu0 %1035 }
 0x534   : > { %1815 = vrcp.f32 %v1036_v27  ;;  %v1797_v27 = vld [vmem:[%s2560_s11] sm:$0xff]  }
 0x537   : > { %v807_v28 = vpop.permute.xlu0 %806 }
 0x538   : > { %v812_v29 = vsel %vm696_vm3, %v807_v28, 0  ;;  %v1798_v28 = vld [vmem:[%s2560_s11 + $0x8] sm:$0xff]  }
 0x539   : > { %1632 = vmatpush3.bf16.msra.mxu0 %v812_v29  ;;  %v1799_v29 = vld [vmem:[%s2560_s11 + $0x10] sm:$0xff]  }
 0x53a   : > { %1643 = vmatprep.subr.bf16.mxu0 %v2047_v8 }
 0x53c   : > { %1634 = vmatmul.mubr.msk.bf16.vlgmr.msra.gmra.mrb[8].mxu0 %vm631_vm2, %v805_v30  ;;  %v1800_v30 = vld [vmem:[%s2560_s11 + $0x18] sm:$0xff]  }
 0x53d   : > { %1645 = vmatprep.mubr.msk.bf16.mxu0 %vm2048_vm1, %v2047_v8 }
 0x53e   : > { %v1816_v31 = vpop.eup %1815 }
 0x53f   : > { %v1038_v32 = vmul.f32 %v1816_v31, %v1808_v11  ;;  %v1557_v31 = vld [vmem:[%s2559_s10] ss:$0 sm:$0xff] }
 0x541   : > { %1549 = vst.msk [vmem:[%s2388_s22 + $0x18] sm:$0xff] %vm631_vm2, %v1038_v32  ;;  %v1041_v41 = vpack.c.bf16 %v1038_v32, %v1038_v32 }
 0x550   : > { %v918_v33 = vpop.xlane.xlu1 %917 }
 0x551   : > { %1817 = vrcp.f32 %v918_v33 }
 0x554   : > { %v925_v34 = vpop.permute.xlu1 %924 }
 0x555   : > { %v930_v35 = vsel %vm696_vm3, %v925_v34, 0 }
 0x556   : > { %1644 = vmatpush3.bf16.msra.mxu0 %v930_v35 }
 0x557   : > { %1655 = vmatprep.subr.bf16.mxu0 %v2047_v8 }
 0x558   : > { %v1043_v38 = vpop.permute.xlu1 %1042 }
 0x559   : > { %v1048_v40 = vsel %vm696_vm3, %v1043_v38, 0 }
 0x55b   : > { %v1818_v36 = vpop.eup %1817 }
 0x55c   : > { %v920_v37 = vmul.f32 %v1818_v36, %v1810_v16  ;;  %v1795_v16 = vld [vmem:[%s2558_s9] sm:$0xff]  }
 0x55e   : > { %v923_v39 = vpack.c.bf16 %v920_v37, %v920_v37  ;;  %1546 = vst.msk [vmem:[%s2388_s22 + $0x10] sm:$0xff] %vm631_vm2, %v920_v37 }
 0x560   : > { %1646 = vmatmul.mubr.msk.bf16.vlgmr.msra.gmra.mrb[12].mxu0 %vm631_vm2, %v923_v39 }
 0x561   : > { %1656 = vmatpush3.bf16.msra.mxu0 %v1048_v40  ;;  %1657 = vmatprep.mubr.msk.bf16.mxu0 %vm2048_vm1, %v2047_v8 }
 0x562   : > { %1669 = vmatprep.subr.bf16.mxu0 %v2047_v8 }
 0x568   : > { %1658 = vmatmul.mubr.msk.bf16.vlgmr.msra.gmra.mrb[16].mxu0 %vm631_vm2, %v1041_v41 }
 0x569   : > { %1673 = vmatprep.mubr.msk.bf16.mxu0 %vm2048_vm1, %v2047_v8  ;;  %1670 = vmatpush3.bf16.msra.mxu0 %v1795_v16 }
 0x56a   : > { %1671 = vmatprep.subr.bf16.mxu0 %v2047_v8 }
 0x5fe   : > { %v734_v42 = vpop.f32.mrb[4].mxu0 }
 0x5ff   : > { %740 = vst.msk [vmem:[#allocation2] sm:$0xff] %vm631_vm2, %v734_v42  ;;  %v1623_v43 = vpop.f32.mrb[5].mxu0 }
 0x600   : > { %v737_v44 = vpop.f32.mrb[6].mxu0 }
 0x601   : > { %v1624_v45 = vpop.f32.mrb[7].mxu0 }
 0x60f   : > { %v848_v46 = vpop.f32.mrb[8].mxu0 }
 0x610   : > { %855 = vrot.lane.b32.xlu0 %v848_v46, %s2060_s13  ;;  %v1635_v47 = vpop.f32.mrb[9].mxu0 }
 0x611   : > { %v851_v48 = vpop.f32.mrb[10].mxu0 }
 0x612   : > { %v1636_v49 = vpop.f32.mrb[11].mxu0 }
 0x633   : > { %v966_v52 = vpop.f32.mrb[12].mxu0 }
 0x634   : > { %973 = vrot.lane.b32.xlu1 %v966_v52, %s2061_s28  ;;  %v1647_v53 = vpop.f32.mrb[13].mxu0  ;;  %s1939_s28 = sshll.u32 %s2063_s20, 4  ;;  %s1940_s28 = int_to_ptr.vmem [resolvable:$false] %s1939_s28 }
 0x635   : > { %v969_v54 = vpop.f32.mrb[14].mxu0  ;;  %s1941_s22 = scalar_lea.vmem %s1940_s28, 1024  ;;  %p1942_p8 = scmp.lt.s32.totalorder %s2464_s15, %s1940_s28 }
 0x636   : > { %v1648_v55 = vpop.f32.mrb[15].mxu0  ;;  %p1943_p11 = scmp.lt.s32.totalorder %s1941_s22, %s1935_s25 }
 0x638   : > { %p1944_p13 = por %p1943_p11, %p1942_p8 }
 0x63a   : > { %p1945_p1 = pnand %p1944_p13, %p1938_p7 }
 0x63b   : > { %v1084_v56 = vpop.f32.mrb[16].mxu0 }
 0x63c   : > { %1091 = vrot.lane.b32.xlu0 %v1084_v56, %s2062_s16  ;;  %v1659_v57 = vpop.f32.mrb[17].mxu0 }
 0x63d   : > { %v1087_v58 = vpop.f32.mrb[18].mxu0 }
 0x63e   : > { %v1660_v59 = vpop.f32.mrb[19].mxu0 }
 0x682   : > { %v856_v60 = vpop.permute.xlu0 %855 }
 0x683   : > { %859 = vst.msk [vmem:[#allocation2] sm:$0xff] %vm858_vm4, %v856_v60 }
 0x6a6   : > { %v974_v61 = vpop.permute.xlu1 %973 }
 0x6a7   : > { %977 = vst.msk [vmem:[#allocation2] sm:$0xff] %vm976_vm5, %v974_v61 }
 0x6ae   : > { %v1092_v62 = vpop.permute.xlu0 %1091 }
 0x6af   : > { %1095 = vst.msk [vmem:[#allocation2] sm:$0xff] %vm1094_vm6, %v1092_v62 }
 0x6b6   : > { %v1096_v63 = vld [vmem:[#allocation2] sm:$0xff] }
 0x6b7   : > { %v1097_v1 = vpack.c.bf16 %v1096_v63, %v1096_v63 }
 0x6b9   : > { %1666 = vmatmul.mubr.msk.bf16.vlgmr.msra.gmra.mrb[16].mxu1 %vm529_vm0, %v1097_v1 }
 0x6ba   : > { %1685 = vmatprep.mubr.msk.bf16.mxu1 %vm2048_vm1, %v2047_v8  ;;  %1678 = vmatpush3.bf16.msra.mxu1 %v1797_v27 }
 0x6bb   : > { %1679 = vmatprep.subr.bf16.mxu1 %v2047_v8 }
 0x6be   : > { %1680 = vmatpush3.bf16.msra.mxu1 %v1798_v28 }
 0x6bf   : > { %1681 = vmatprep.subr.bf16.mxu1 %v2047_v8 }
 0x6c2   : > { %1682 = vmatpush3.bf16.msra.mxu1 %v1799_v29 }
 0x6c3   : > { %1683 = vmatprep.subr.bf16.mxu1 %v2047_v8 }
 0x6c6   : > { %1684 = vmatpush3.bf16.msra.mxu1 %v1800_v30 }
 0x78c   : > { %v1158_v3 = vpop.f32.mrb[16].mxu1 }
 0x78d   : > { %v1159_v4 = vadd.f32 %v1551_v2, %v1158_v3  ;;  %v1667_v5 = vpop.f32.mrb[17].mxu1 }
 0x78e   : > { %v1161_v6 = vpop.f32.mrb[18].mxu1 }
 0x78f   : > { %v2430_v7 = vadd.f32 %v1159_v4, %v2315_v0  ;;  %v1668_v9 = vpop.f32.mrb[19].mxu1  ;;  %v1796_v0 = vld [vmem:[%s2558_s9 + $0x8] sm:$0xff]  }
 0x790   : > { %1672 = vmatpush3.bf16.msra.mxu0 %v1796_v0 }
 0x791   : > { %v1167_v10 = vsel %vm529_vm0, %v2430_v7, 0.0 }
 0x792   : > { %1168 = vadd.xlane.f32.xlu1 %v1167_v10 }
 0x81f   : > { %v1169_v11 = vpop.xlane.xlu1 %1168 }
 0x820   : > { %v1170_v12 = vmul.f32 0.03125, %v1169_v11 }
 0x822   : > { %v1171_v13 = vsub.f32 %v2430_v7, %v1170_v12 }
 0x824   : > { %v1172_v14 = vmul.f32 %v1171_v13, %v1171_v13 }
 0x826   : > { %v1173_v15 = vsel %vm529_vm0, %v1172_v14, 0.0 }
 0x827   : > { %1174 = vadd.xlane.f32.xlu0 %v1173_v15 }
 0x8b4   : > { %v1175_v17 = vpop.xlane.xlu0 %1174 }
 0x8b5   : > { %v1176_v18 = vmul.f32 0.03125, %v1175_v17 }
 0x8b7   : > { %v1177_v19 = vadd.f32 1e-06, %v1176_v18 }
 0x8b9   : > { %1819 = vrsqrt.f32 %v1177_v19 }
 0x8c3   : > { %v1820_v20 = vpop.eup %1819 }
 0x8c4   : > { %v1179_v22 = vmul.f32 %v1820_v20, %v1171_v13 }
 0x8c6   : > { %v1186_v24 = vmul.f32 %v1555_v21, %v1179_v22 }
 0x8c8   : > { %v1193_v25 = vadd.f32 %v1556_v23, %v1186_v24 }
 0x8ca   : > { %v1194_v26 = vpack.c.bf16 %v1193_v25, %v1193_v25 }
 0x8cc   : > { %1674 = vmatmul.mubr.msk.bf16.vlgmr.msra.gmra.mrb[20].mxu0 %vm529_vm0, %v1194_v26 }
 0x99f   : > { %v1255_v32 = vpop.f32.mrb[20].mxu0 }
 0x9a0   : > { %v1256_v33 = vadd.f32 %v1557_v31, %v1255_v32  ;;  %v1675_v34 = vpop.f32.mrb[21].mxu0 }
 0x9a1   : > { %v1258_v35 = vpop.f32.mrb[22].mxu0 }
 0x9a2   : > { %v1262_v36 = vmul.f32 0.70710677, %v1256_v33  ;;  %v1676_v37 = vpop.f32.mrb[23].mxu0  ;;  %v1261_v38 = vmul.f32 0.5, %v1256_v33 }
 0x9a4   : > { %1821 = verf.f32 %v1262_v36 }
 0x9ae   : > { %v1822_v8 = vpop.eup %1821 }
 0x9af   : > { %v1264_v39 = vadd.f32 1.0, %v1822_v8 }
 0x9b1   : > { %v1265_v40 = vmul.f32 %v1264_v39, %v1261_v38 }
 0x9b3   : > { %v1266_v41 = vpack.c.bf16 %v1265_v40, %v1265_v40 }
 0x9b5   : > { %1686 = vmatmul.mubr.msk.bf16.vlgmr.msra.gmra.mrb[20].mxu1 %vm1306_vm7, %v1266_v41 }
 0x9b6   : > { %1948 = shalt.err (!%p1945_p1)
}
 0x9b7   : > { %s1949_s16 = scalar_lea.hbm %s2469_s19, 512  ;;  %s1953_s29 = scalar_lea.hbm %s2563_s14, 1024 }
 0x9b8   : > { %p1950_p0 = scmp.ne.s32.totalorder %s2469_s19, %s1949_s16  ;;  %p1954_p9 = scmp.lt.u32.totalorder %s2469_s19, %s2563_s14 }
 0x9b9   : > { %p1955_p12 = scmp.lt.u32.totalorder %s1953_s29, %s1949_s16  ;;  %p1957_p2 = scmp.lt.u32.totalorder %s1949_s16, %s2469_s19 }
 0x9ba   : > { %p1951_p6 = pnand %p1950_p0, %p2596_p3 }
 0x9bb   : > { %p1956_p10 = por %p1955_p12, %p1954_p9 }
 0x9bc   : > { %p1952_p5 = pneg %p1951_p6 }
 0x9bd   : > { %p1958_p4 = por %p1957_p2, %p1956_p10 }
 0x9bf   : > { %p1959_p7 = pnand %p1958_p4, %p1952_p5 }
 0x9c1   : > { %1962 = shalt.err (!%p1959_p7)
}
 0x9c2   : > { %s2064_s25 = smov 128   ;;  %s1531_s20 = sshll.u32 %s2384_s18, 3 }
 0x9c3   : > { %1706 = dma.vmem_to_hbm [thread:$0]  (%p2596_p3), %s2464_s15, 512, %s2469_s19, %s1358_s24, %s2064_s25, %s2064_s25, %s2060_s13  }
 0x9c4   : > { %s2597_s26 = sld [smem:[#allocation26_spill]]  ;;  %s1569_s16 = sshll.u32 %s2162_s17, 7 }
 0x9c5   : > { %s513_s21 = scalar_lea.vmem [#allocation11], %s1531_s20  ;;  %s2598_s0 = sld [smem:[#allocation27_spill]] }
 0x9c6   : > { %s1371_s29 = sshll.u32 %s513_s21, 4  ;;  %s1353_s17 = scalar_lea.sflag [#allocation5], %s2384_s18  ;;  %s2507_s29 = int_to_ptr.vmem [resolvable:$true] %s1371_s29 }
 0x9c7   : > { %s1963_s15 = scalar_lea.vmem %s2507_s29, 128  ;;  %s2065_s19 = smov [#allocation11]  }
 0x9c8   : > { %p1964_p8 = scmp.ne.s32.totalorder %s2507_s29, %s1963_s15  ;;  %s1967_s24 = sshll.u32 %s2065_s19, 4  ;;  %s1968_s24 = int_to_ptr.vmem [resolvable:$false] %s1967_s24 }
 0x9c9   : > { %s1969_s25 = scalar_lea.vmem %s1968_s24, 256  ;;  %p1970_p1 = scmp.lt.s32.totalorder %s2507_s29, %s1968_s24 }
 0x9ca   : > { %v1561_v42 = vld [vmem:[%s2597_s26] ss:$0 sm:$0xff]  ;;  %p1965_p11 = pnand %p1964_p8, %p2596_p3  ;;  %p1971_p0 = scmp.lt.s32.totalorder %s1969_s25, %s1963_s15 }
 0x9cb   : > { %s2505_s13 = scalar_lea.hbm %s2598_s0, %s1569_s16 }
 0x9cc   : > { %p1966_p13 = pneg %p1965_p11  ;;  %p1972_p6 = por %p1971_p0, %p1970_p1 }
 0x9ce   : > { %p1973_p5 = pnand %p1972_p6, %p1966_p13 }
 0xa88   : > { %v1344_v43 = vpop.f32.mrb[20].mxu1 }
 0xa89   : > { %v1345_v44 = vadd.f32 %v1561_v42, %v1344_v43  ;;  %v1687_v45 = vpop.f32.mrb[21].mxu1 }
 0xa8a   : > { %v1347_v46 = vpop.f32.mrb[22].mxu1 }
 0xa8b   : > { %v1350_v47 = vadd.f32 %v1345_v44, %v2430_v7  ;;  %v1688_v48 = vpop.f32.mrb[23].mxu1 }
 0xa8d   : > { %1351 = vst.msk [vmem:[%s513_s21] sm:$0xff] %vm529_vm0, %v1350_v47 }
 0xa8e   : > { %1976 = shalt.err (!%p1973_p5)
}
 0xa8f   : > { %s1977_s18 = scalar_lea.hbm %s2505_s13, 128  ;;  %s1981_s22 = scalar_lea.hbm %s2598_s0, 256 }
 0xa90   : > { %p1978_p9 = scmp.ne.s32.totalorder %s2505_s13, %s1977_s18  ;;  %p1982_p2 = scmp.lt.u32.totalorder %s2505_s13, %s2598_s0 }
 0xa91   : > { %p1983_p4 = scmp.lt.u32.totalorder %s1981_s22, %s1977_s18  ;;  %p1985_p8 = scmp.lt.u32.totalorder %s1977_s18, %s2505_s13 }
 0xa92   : > { %p1979_p12 = pnand %p1978_p9, %p2596_p3 }
 0xa93   : > { %p1984_p7 = por %p1983_p4, %p1982_p2 }
 0xa94   : > { %p1980_p10 = pneg %p1979_p12 }
 0xa95   : > { %p1986_p11 = por %p1985_p8, %p1984_p7 }
 0xa97   : > { %p1987_p13 = pnand %p1986_p11, %p1980_p10 }
 0xa99   : > { %1990 = shalt.err (!%p1987_p13)
}
 0xa9a   : > { %1705 = dma.vmem_to_hbm [thread:$0]  (%p2596_p3), %s2507_s29, 128, %s2505_s13, %s1353_s17  }
 0xa9b PF: > { %s2599_s21 = sld [smem:[#allocation21_spill]]  ;;  %s2600_s27 = sld [smem:[#allocation19_spill]] }
 0xa9c   : > { %s2601_s12 = sld [smem:[#allocation24_spill]] }
 0xaa1   : > { %p1737_p1 = scmp.ge.s32.totalorder %s2599_s21, 2  ;;  %s1399_s15 = sand.u32 1, %s2600_s27  }
 0xaa2   : > { %p2602_p0 = scmp.ne.s32.totalorder %s2601_s12, 0  ;;  %s1400_s19 = scalar_lea.sflag [#allocation5], %s1399_s15 }
 0xaa4   : > { %p1723_p6 = pnand %p1737_p1, %p2602_p0 }
 0xaa6   : > { %2020 = dma.done.wait (!%p1723_p6), %s1400_s19, 128  }
 0xaa7   : > { %2022 = vsyncadd (!%p1723_p6), %s1400_s19, 4294967168  ;;  %s1409_s24 = scalar_lea.sflag [#allocation13], %s1399_s15 }
 0xaa8   : > { %2024 = dma.done.wait (!%p1723_p6), %s1409_s24, 512  }
 0xaa9   : > { %2026 = vsyncadd (!%p1723_p6), %s1409_s24, 4294966784  ;;  %s2603_s16 = sld [smem:[#allocation22_spill]]  ;;  %s2604_s23 = sld [smem:[#allocation20_spill]] }
 0xaaa   : > { %s2605_s15 = sld [smem:[#allocation23_spill]]  ;;  %s2606_s29 = smov %s2033_s30 }
 0xaaf   : > { %p31_p3 = scmp.ge.s32.totalorder %s2603_s16, 4   ;;  %s2607_s30 = smov %s2604_s23 }
 0xab1   :  { %33 = sbr.rel (!%p31_p3) target bundleno = 12 (0xc), region = 144 }
 0xab8   :  { %1414 = vsyncpa [#allocation4], 1 }
 0xab9   :  { %1416 = vsyncpa [#allocation4 + $0x1], 1 }
 0xaba   :  { %1417 = vsyncpa [#allocation7], 1 }
 0xabb   :  { %1418 = vsyncpa [#allocation10], 1 }
 0xabc   :  { %1419 = vsyncpa [#allocation5], 1 }
 0xabd   :  { %1421 = vsyncpa [#allocation5 + $0x1], 1 }
 0xabe   :  { %1422 = vsyncpa [#allocation13], 1 }
 0xabf   :  { %1424 = vsyncpa [#allocation13 + $0x1], 1 }

</bundles_post_ra>
